<compile_context>
chip_gen: v7x
topology: tpu7x:2x2x1
jax: 0.10.0
libtpu: 0.0.40
codegen_flags: <defaults>
</compile_context>

<pallas_src>
import functools

import jax
import jax.numpy as jnp
from jax.experimental import pallas as pl
from jax.experimental.pallas import tpu as pltpu

_LANE = 128
_SUBLANE = 8


def _round_up(x: int, m: int) -> int:
    return ((x + m - 1) // m) * m


# --------------------------------------------------------------------------- #
# One-time parameter packing (run at init / parameter-load time, not per call) #
# --------------------------------------------------------------------------- #
def pack_params(w1, b1, w2, b2, ws, bs, *, compute_dtype=None):
    """Pack ResidualBlockOutput weights for the Pallas kernel.

    w1: (input_dim, hidden_dim),  b1: (hidden_dim,) / (1, hidden_dim)
    w2: (hidden_dim, output_dim), b2: (output_dim,) / (1, output_dim)
    ws: (input_dim, output_dim),  bs: (output_dim,) / (1, output_dim)

    * hidden dim is zero-padded to a multiple of 128 so the in-kernel split of
      the fused matmul result lands on a vreg lane boundary (no relayout copy).
    * layer1 and skip share the LHS x, so their weights/biases are fused along
      the output axis: wx = [W1 | Ws], bx = [b1 | bs] -> one MXU pass over x.
    * input_dim / output_dim are NOT padded (K/N < 128 is fine on the MXU;
      padding only inflates HBM traffic for this mem-bound kernel).
    * if compute_dtype is given (e.g. bf16) the weight matrices are pre-cast so
      they travel HBM->VMEM at half width and need no per-call VPU cast; biases
      keep their dtype and are added to the f32 accumulator.
    """
    input_dim, hidden_dim = w1.shape
    output_dim = w2.shape[1]
    hid_p = _round_up(hidden_dim, _LANE)

    b1 = jnp.reshape(b1, (1, hidden_dim))
    b2 = jnp.reshape(b2, (1, output_dim))
    bs = jnp.reshape(bs, (1, output_dim))

    # Hidden-dim zero padding is exact: padded columns of W1/b1 produce ReLU(0)=0
    # activations that multiply zero rows of the padded W2.
    w1_p = jnp.zeros((input_dim, hid_p), w1.dtype).at[:, :hidden_dim].set(w1)
    b1_p = jnp.zeros((1, hid_p), b1.dtype).at[:, :hidden_dim].set(b1)
    w2_p = jnp.zeros((hid_p, output_dim), w2.dtype).at[:hidden_dim, :].set(w2)

    wx = jnp.concatenate([w1_p, ws], axis=1)      # (input_dim, hid_p + output_dim)
    bx = jnp.concatenate([b1_p, bs], axis=1)      # (1, hid_p + output_dim)

    if compute_dtype is not None:
        wx = wx.astype(compute_dtype)
        w2_p = w2_p.astype(compute_dtype)

    return {
        "wx": wx, "bx": bx, "w2": w2_p, "b2": b2,
        "input_dim": int(input_dim), "hidden_dim": int(hidden_dim),
        "output_dim": int(output_dim), "hid_p": int(hid_p),
    }


# --------------------------------------------------------------------------- #
# Kernel                                                                      #
# --------------------------------------------------------------------------- #
def _residual_block_output_kernel(x_ref, wx_ref, bx_ref, w2_ref, b2_ref, o_ref,
                                  *, hid_p):
    """One batch tile of: out = (ReLU(x @ W1 + b1) @ W2 + b2) + (x @ Ws + bs).

    layer1 and skip share the LHS x, so their weights arrive pre-fused as
    wx = [W1 | Ws], bx = [b1 | bs]; a single MXU pass produces both branches.
    """
    x = x_ref[...].astype(wx_ref.dtype)           # only per-tile cast; weights pre-cast

    # Fused (layer1 | skip) matmul: one MXU RHS push over the shared LHS.
    t = jnp.dot(x, wx_ref[...], preferred_element_type=jnp.float32)
    t = t + bx_ref[...].astype(jnp.float32)

    h = jnp.maximum(t[:, :hid_p], 0.0)            # ReLU; hid_p is 128-aligned
    res = t[:, hid_p:]                            # skip branch; starts on a lane boundary

    out = jnp.dot(h.astype(w2_ref.dtype), w2_ref[...],
                  preferred_element_type=jnp.float32)
    out = out + b2_ref[...].astype(jnp.float32)

    o_ref[...] = (out + res).astype(o_ref.dtype)


# --------------------------------------------------------------------------- #
# Wrapper                                                                     #
# --------------------------------------------------------------------------- #
def residual_block_output(x, packed, *, block_b=None):
    """Forward pass. x: (B, input_dim); packed: output of pack_params()."""
    B, input_dim = x.shape
    assert input_dim == packed["input_dim"], "input feature dim mismatch"
    hid_p = packed["hid_p"]
    output_dim = packed["output_dim"]
    wx, bx, w2, b2 = packed["wx"], packed["bx"], packed["w2"], packed["b2"]
    wx_cols = hid_p + output_dim

    # ---- batch tiling --------------------------------------------------------
    # Mem-bound: large tiles reach ~85% of HBM roofline (vs ~63% at 256 rows) and
    # amortize the ~0.35us per-grid-step overhead.
    if block_b is None:
        block_b = min(1024, _round_up(B, _SUBLANE))
    block_b = max(_SUBLANE, _round_up(block_b, _SUBLANE))
    B_p = _round_up(B, block_b)
    # v7x has 2 TensorCores; the "parallel" batch axis only uses both when the
    # grid has >= 2 steps, so split a 1-step grid when there is enough work.
    if B_p // block_b < 2 and B_p >= 2 * _SUBLANE:
        block_b = _round_up(B_p // 2, _SUBLANE)
        B_p = _round_up(B, block_b)
    grid = (B_p // block_b,)

    # Batch padding only (no feature padding); padded rows are sliced off below.
    x_in = x if B_p == B else jnp.zeros((B_p, input_dim), x.dtype).at[:B].set(x)

    # ---- VMEM budget / cost hint --------------------------------------------
    def _nbytes(a):
        return int(a.size) * a.dtype.itemsize

    tile_bytes = block_b * (input_dim + output_dim) * x.dtype.itemsize
    weight_bytes = _nbytes(wx) + _nbytes(bx) + _nbytes(w2) + _nbytes(b2)
    interm_bytes = 2 * block_b * wx_cols * 4          # f32 intermediates
    footprint = 2 * tile_bytes + 2 * weight_bytes + interm_bytes
    want = 2 * footprint + (8 << 20)
    try:
        vmem_cap = int(pltpu.get_tpu_info().vmem_capacity_bytes)
    except Exception:                                  # pragma: no cover
        vmem_cap = 64 << 20                            # conservative (v7x per-core)
    vmem_limit = int(min(max(want, 32 << 20), int(0.8 * vmem_cap)))

    cost = pl.CostEstimate(
        flops=2 * B_p * (input_dim * wx_cols + hid_p * output_dim),
        transcendentals=0,
        bytes_accessed=(_nbytes(x_in) + weight_bytes
                        + B_p * output_dim * x.dtype.itemsize),
    )

    kernel = functools.partial(_residual_block_output_kernel, hid_p=hid_p)

    def _run(weight_mode):
        wkw = {} if weight_mode is None else {"pipeline_mode": weight_mode}
        return pl.pallas_call(
            kernel,
            out_shape=jax.ShapeDtypeStruct((B_p, output_dim), x.dtype),
            grid_spec=pltpu.PrefetchScalarGridSpec(
                num_scalar_prefetch=0,
                grid=grid,
                in_specs=[
                    # x tile: full (unpadded) K as last dim -> exempt from 128 rule.
                    pl.BlockSpec((block_b, input_dim), lambda i: (i, 0)),
                    # constant-index weight/bias blocks (fetched once per call).
                    pl.BlockSpec((input_dim, wx_cols), lambda i: (0, 0), **wkw),
                    pl.BlockSpec((1, wx_cols), lambda i: (0, 0), **wkw),
                    pl.BlockSpec((hid_p, output_dim), lambda i: (0, 0), **wkw),
                    pl.BlockSpec((1, output_dim), lambda i: (0, 0), **wkw),
                ],
                # Unpadded output dim: masked stores, but ~8x less HBM write
                # traffic than lane-padding to 128 plus a post-call slice.
                out_specs=pl.BlockSpec((block_b, output_dim), lambda i: (i, 0)),
            ),
            compiler_params=pltpu.CompilerParams(
                dimension_semantics=("parallel",),
                vmem_limit_bytes=vmem_limit,
            ),
            cost_estimate=cost,
        )(x_in, wx, bx, w2, b2)

    try:
        # Weight blocks never change index -> single buffering saves VMEM (v7x).
        out_padded = _run(pl.Buffered(1))
    except Exception:
        # Fallback (e.g. installed JAX rejects pipeline_mode / Buffered(1)).
        out_padded = _run(None)

    return out_padded if B_p == B else out_padded[:B]


# --------------------------------------------------------------------------- #
# Reference + demo                                                            #
# --------------------------------------------------------------------------- #
def init_params(key, input_dim, hidden_dim, output_dim, dtype=jnp.float32):
    """Deterministic synthetic init (PyTorch nn.Linear-like uniform ranges)."""
    ks = jax.random.split(key, 6)

    def linear_init(kw, kb, fan_in, fan_out):
        bound = 1.0 / (fan_in ** 0.5)
        # stored as (in, out) so the kernel does x @ W
        w = jax.random.uniform(kw, (fan_in, fan_out), dtype, -bound, bound)
        b = jax.random.uniform(kb, (1, fan_out), dtype, -bound, bound)
        return w, b

    w1, b1 = linear_init(ks[0], ks[1], input_dim, hidden_dim)
    w2, b2 = linear_init(ks[2], ks[3], hidden_dim, output_dim)
    ws, bs = linear_init(ks[4], ks[5], input_dim, output_dim)
    return w1, b1, w2, b2, ws, bs


def reference(x, w1, b1, w2, b2, ws, bs):
    residual = x @ ws + bs.reshape(1, -1)
    out = jnp.maximum(x @ w1 + b1.reshape(1, -1), 0.0)
    return out @ w2 + b2.reshape(1, -1) + residual


if __name__ == "__main__":
    key = jax.random.PRNGKey(0)
    k_x, k_p, k_x2, k_x3 = jax.random.split(key, 4)

    input_dim, hidden_dim, output_dim = 32, 64, 16
    raw = init_params(k_p, input_dim, hidden_dim, output_dim)

    # Pack ONCE (parameter-load time), reuse across forward calls.
    packed_f32 = pack_params(*raw)
    packed_bf16 = pack_params(*raw, compute_dtype=jnp.bfloat16)

    # Case 1: tiny batch -> single grid step, f32 end-to-end.
    x = jax.random.normal(k_x, (8, input_dim), jnp.float32)
    out = jax.block_until_ready(residual_block_output(x, packed_f32))
    ref = reference(x, *raw)
    assert out.shape == (8, output_dim)
    assert jnp.allclose(out, ref, atol=1e-4, rtol=1e-4), "mismatch (f32, 1 step)"

    # Case 2: batch not divisible by the tile -> batch padding + multi-step grid.
    x2 = jax.random.normal(k_x2, (50, input_dim), jnp.float32)
    out2 = jax.block_until_ready(residual_block_output(x2, packed_f32, block_b=16))
    ref2 = reference(x2, *raw)
    assert out2.shape == (50, output_dim)
    assert jnp.allclose(out2, ref2, atol=1e-4, rtol=1e-4), "mismatch (f32, tiled)"

    # Case 3: default tile selection, exercises the >=2-step split for dual-TC chips.
    x3 = jax.random.normal(k_x3, (200, input_dim), jnp.float32)
    out3 = jax.block_until_ready(residual_block_output(x3, packed_f32))
    ref3 = reference(x3, *raw)
    assert out3.shape == (200, output_dim)
    assert jnp.allclose(out3, ref3, atol=1e-4, rtol=1e-4), "mismatch (f32, auto-tile)"

    # Case 4: pre-cast bf16 weights (half-width weight DMA), f32 accumulation.
    out4 = jax.block_until_ready(residual_block_output(x, packed_bf16))
    assert jnp.allclose(out4, ref, atol=5e-2, rtol=5e-2), "mismatch (bf16 weights)"

    print("KERNEL_OK")
</pallas_src>

<mosaic_0001>
module attributes {stable_mosaic.version = 11 : i64} {
  func.func @_residual_block_output_kernel(%arg0: i32, %arg1: memref<8x32xf32, #tpu.memory_space<vmem>>, %arg2: memref<32x144xf32, #tpu.memory_space<vmem>>, %arg3: memref<1x144xf32, #tpu.memory_space<vmem>>, %arg4: memref<128x16xf32, #tpu.memory_space<vmem>>, %arg5: memref<1x16xf32, #tpu.memory_space<vmem>>, %arg6: memref<8x16xf32, #tpu.memory_space<vmem>>) attributes {dimension_semantics = [#tpu.dimension_semantics<parallel>], iteration_bounds = array<i64: 1>, scalar_prefetch = 0 : i64, scratch_operands = 0 : i64, tpu.core_type = #tpu.core_type<tc>, window_params = [{transform_indices = @transform_0, window_bounds = array<i64: 8, 32>}, {pipeline_mode = #tpu.pipeline_mode<synchronous>, transform_indices = @transform_1, window_bounds = array<i64: 32, 144>}, {pipeline_mode = #tpu.pipeline_mode<synchronous>, transform_indices = @transform_2, window_bounds = array<i64: 1, 144>}, {pipeline_mode = #tpu.pipeline_mode<synchronous>, transform_indices = @transform_3, window_bounds = array<i64: 128, 16>}, {pipeline_mode = #tpu.pipeline_mode<synchronous>, transform_indices = @transform_4, window_bounds = array<i64: 1, 16>}, {transform_indices = @transform_5, window_bounds = array<i64: 8, 16>}]} {
    %c0 = arith.constant 0 : index
    %c0_0 = arith.constant 0 : index
    %0 = vector.load %arg1[%c0, %c0_0] : memref<8x32xf32, #tpu.memory_space<vmem>>, vector<8x32xf32>
    %c0_1 = arith.constant 0 : index
    %c0_2 = arith.constant 0 : index
    %1 = vector.load %arg2[%c0_1, %c0_2] : memref<32x144xf32, #tpu.memory_space<vmem>>, vector<32x144xf32>
    %cst = arith.constant dense<0.000000e+00> : vector<8x144xf32>
    %2 = tpu.matmul %0, %1, %cst {dimension_numbers = #tpu.dot_dimension_numbers<[1], [0], [0], [1], [0, 0, 1, 1], [], []>} : vector<8x32xf32>, vector<32x144xf32>, vector<8x144xf32> -> vector<8x144xf32>
    %c0_3 = arith.constant 0 : index
    %c0_4 = arith.constant 0 : index
    %3 = vector.load %arg3[%c0_3, %c0_4] : memref<1x144xf32, #tpu.memory_space<vmem>>, vector<1x144xf32>
    %4 = vector.broadcast %3 : vector<1x144xf32> to vector<8x144xf32>
    %5 = arith.addf %2, %4 : vector<8x144xf32>
    %6 = vector.extract_strided_slice %5 {offsets = [0, 0], sizes = [8, 128], strides = [1, 1]} : vector<8x144xf32> to vector<8x128xf32>
    %cst_5 = arith.constant 0.000000e+00 : f32
    %7 = vector.broadcast %cst_5 : f32 to vector<8x128xf32>
    %8 = arith.maximumf %6, %7 : vector<8x128xf32>
    %9 = vector.extract_strided_slice %5 {offsets = [0, 128], sizes = [8, 16], strides = [1, 1]} : vector<8x144xf32> to vector<8x16xf32>
    %c0_6 = arith.constant 0 : index
    %c0_7 = arith.constant 0 : index
    %10 = vector.load %arg4[%c0_6, %c0_7] : memref<128x16xf32, #tpu.memory_space<vmem>>, vector<128x16xf32>
    %cst_8 = arith.constant dense<0.000000e+00> : vector<8x16xf32>
    %11 = tpu.matmul %8, %10, %cst_8 {dimension_numbers = #tpu.dot_dimension_numbers<[1], [0], [0], [1], [0, 0, 1, 1], [], []>} : vector<8x128xf32>, vector<128x16xf32>, vector<8x16xf32> -> vector<8x16xf32>
    %c0_9 = arith.constant 0 : index
    %c0_10 = arith.constant 0 : index
    %12 = vector.load %arg5[%c0_9, %c0_10] : memref<1x16xf32, #tpu.memory_space<vmem>>, vector<1x16xf32>
    %13 = vector.broadcast %12 : vector<1x16xf32> to vector<8x16xf32>
    %14 = arith.addf %11, %13 : vector<8x16xf32>
    %15 = arith.addf %14, %9 : vector<8x16xf32>
    %c0_11 = arith.constant 0 : index
    %c0_12 = arith.constant 0 : index
    %16 = vector.load %arg6[%c0_11, %c0_12] : memref<8x16xf32, #tpu.memory_space<vmem>>, vector<8x16xf32>
    tpu.vector_store %arg6[%c0_11, %c0_12], %15 {strides = array<i32>} : memref<8x16xf32, #tpu.memory_space<vmem>>, vector<8x16xf32>,
    return
  }
  func.func @transform_0(%arg0: i32) -> (i32, i32) {
    %c0_i32 = arith.constant 0 : i32
    %c0_i32_0 = arith.constant 0 : i32
    return %arg0, %c0_i32 : i32, i32
  }
  func.func @transform_1(%arg0: i32) -> (i32, i32) {
    %c0_i32 = arith.constant 0 : i32
    %c0_i32_0 = arith.constant 0 : i32
    %c0_i32_1 = arith.constant 0 : i32
    return %c0_i32, %c0_i32_0 : i32, i32
  }
  func.func @transform_2(%arg0: i32) -> (i32, i32) {
    %c0_i32 = arith.constant 0 : i32
    %c0_i32_0 = arith.constant 0 : i32
    %c0_i32_1 = arith.constant 0 : i32
    return %c0_i32, %c0_i32_0 : i32, i32
  }
  func.func @transform_3(%arg0: i32) -> (i32, i32) {
    %c0_i32 = arith.constant 0 : i32
    %c0_i32_0 = arith.constant 0 : i32
    %c0_i32_1 = arith.constant 0 : i32
    return %c0_i32, %c0_i32_0 : i32, i32
  }
  func.func @transform_4(%arg0: i32) -> (i32, i32) {
    %c0_i32 = arith.constant 0 : i32
    %c0_i32_0 = arith.constant 0 : i32
    %c0_i32_1 = arith.constant 0 : i32
    return %c0_i32, %c0_i32_0 : i32, i32
  }
  func.func @transform_5(%arg0: i32) -> (i32, i32) {
    %c0_i32 = arith.constant 0 : i32
    %c0_i32_0 = arith.constant 0 : i32
    return %arg0, %c0_i32 : i32, i32
  }
}

module attributes {stable_mosaic.version = 11 : i64} {
  func.func @_residual_block_output_kernel(%arg0: i32, %arg1: memref<8x32xf32, #tpu.memory_space<vmem>>, %arg2: memref<32x144xf32, #tpu.memory_space<vmem>>, %arg3: memref<1x144xf32, #tpu.memory_space<vmem>>, %arg4: memref<128x16xf32, #tpu.memory_space<vmem>>, %arg5: memref<1x16xf32, #tpu.memory_space<vmem>>, %arg6: memref<8x16xf32, #tpu.memory_space<vmem>>) attributes {dimension_semantics = [#tpu.dimension_semantics<parallel>], iteration_bounds = array<i64: 1>, scalar_prefetch = 0 : i64, scratch_operands = 0 : i64, tpu.core_type = #tpu.core_type<tc>, window_params = [{transform_indices = @transform_0, window_bounds = array<i64: 8, 32>}, {pipeline_mode = #tpu.pipeline_mode<synchronous>, transform_indices = @transform_1, window_bounds = array<i64: 32, 144>}, {pipeline_mode = #tpu.pipeline_mode<synchronous>, transform_indices = @transform_2, window_bounds = array<i64: 1, 144>}, {pipeline_mode = #tpu.pipeline_mode<synchronous>, transform_indices = @transform_3, window_bounds = array<i64: 128, 16>}, {pipeline_mode = #tpu.pipeline_mode<synchronous>, transform_indices = @transform_4, window_bounds = array<i64: 1, 16>}, {transform_indices = @transform_5, window_bounds = array<i64: 8, 16>}]} {
    %c0 = arith.constant 0 : index
    %c0_0 = arith.constant 0 : index
    %0 = vector.load %arg1[%c0, %c0_0] : memref<8x32xf32, #tpu.memory_space<vmem>>, vector<8x32xf32>
    %c0_1 = arith.constant 0 : index
    %c0_2 = arith.constant 0 : index
    %1 = vector.load %arg2[%c0_1, %c0_2] : memref<32x144xf32, #tpu.memory_space<vmem>>, vector<32x144xf32>
    %cst = arith.constant dense<0.000000e+00> : vector<8x144xf32>
    %2 = tpu.matmul %0, %1, %cst {dimension_numbers = #tpu.dot_dimension_numbers<[1], [0], [0], [1], [0, 0, 1, 1], [], []>} : vector<8x32xf32>, vector<32x144xf32>, vector<8x144xf32> -> vector<8x144xf32>
    %c0_3 = arith.constant 0 : index
    %c0_4 = arith.constant 0 : index
    %3 = vector.load %arg3[%c0_3, %c0_4] : memref<1x144xf32, #tpu.memory_space<vmem>>, vector<1x144xf32>
    %4 = vector.broadcast %3 : vector<1x144xf32> to vector<8x144xf32>
    %5 = arith.addf %2, %4 : vector<8x144xf32>
    %6 = vector.extract_strided_slice %5 {offsets = [0, 0], sizes = [8, 128], strides = [1, 1]} : vector<8x144xf32> to vector<8x128xf32>
    %cst_5 = arith.constant 0.000000e+00 : f32
    %7 = vector.broadcast %cst_5 : f32 to vector<8x128xf32>
    %8 = arith.maximumf %6, %7 : vector<8x128xf32>
    %9 = vector.extract_strided_slice %5 {offsets = [0, 128], sizes = [8, 16], strides = [1, 1]} : vector<8x144xf32> to vector<8x16xf32>
    %c0_6 = arith.constant 0 : index
    %c0_7 = arith.constant 0 : index
    %10 = vector.load %arg4[%c0_6, %c0_7] : memref<128x16xf32, #tpu.memory_space<vmem>>, vector<128x16xf32>
    %cst_8 = arith.constant dense<0.000000e+00> : vector<8x16xf32>
    %11 = tpu.matmul %8, %10, %cst_8 {dimension_numbers = #tpu.dot_dimension_numbers<[1], [0], [0], [1], [0, 0, 1, 1], [], []>} : vector<8x128xf32>, vector<128x16xf32>, vector<8x16xf32> -> vector<8x16xf32>
    %c0_9 = arith.constant 0 : index
    %c0_10 = arith.constant 0 : index
    %12 = vector.load %arg5[%c0_9, %c0_10] : memref<1x16xf32, #tpu.memory_space<vmem>>, vector<1x16xf32>
    %13 = vector.broadcast %12 : vector<1x16xf32> to vector<8x16xf32>
    %14 = arith.addf %11, %13 : vector<8x16xf32>
    %15 = arith.addf %14, %9 : vector<8x16xf32>
    %c0_11 = arith.constant 0 : index
    %c0_12 = arith.constant 0 : index
    %16 = vector.load %arg6[%c0_11, %c0_12] : memref<8x16xf32, #tpu.memory_space<vmem>>, vector<8x16xf32>
    tpu.vector_store %arg6[%c0_11, %c0_12], %15 {strides = array<i32>} : memref<8x16xf32, #tpu.memory_space<vmem>>, vector<8x16xf32>,
    return
  }
  func.func @transform_0(%arg0: i32) -> (i32, i32) {
    %c0_i32 = arith.constant 0 : i32
    %c0_i32_0 = arith.constant 0 : i32
    return %arg0, %c0_i32 : i32, i32
  }
  func.func @transform_1(%arg0: i32) -> (i32, i32) {
    %c0_i32 = arith.constant 0 : i32
    %c0_i32_0 = arith.constant 0 : i32
    %c0_i32_1 = arith.constant 0 : i32
    return %c0_i32, %c0_i32_0 : i32, i32
  }
  func.func @transform_2(%arg0: i32) -> (i32, i32) {
    %c0_i32 = arith.constant 0 : i32
    %c0_i32_0 = arith.constant 0 : i32
    %c0_i32_1 = arith.constant 0 : i32
    return %c0_i32, %c0_i32_0 : i32, i32
  }
  func.func @transform_3(%arg0: i32) -> (i32, i32) {
    %c0_i32 = arith.constant 0 : i32
    %c0_i32_0 = arith.constant 0 : i32
    %c0_i32_1 = arith.constant 0 : i32
    return %c0_i32, %c0_i32_0 : i32, i32
  }
  func.func @transform_4(%arg0: i32) -> (i32, i32) {
    %c0_i32 = arith.constant 0 : i32
    %c0_i32_0 = arith.constant 0 : i32
    %c0_i32_1 = arith.constant 0 : i32
    return %c0_i32, %c0_i32_0 : i32, i32
  }
  func.func @transform_5(%arg0: i32) -> (i32, i32) {
    %c0_i32 = arith.constant 0 : i32
    %c0_i32_0 = arith.constant 0 : i32
    return %arg0, %c0_i32 : i32, i32
  }
}

</mosaic_0001>

<bundles_post_ra>
// kernel: tpu_custom_call.1
= control target key start
LH: loop header
LB: loop body
LE: loop exit
PB: predicated region body
PF: predicated region fallthrough
CT: control target
= control target key end

     0   :  { %v342_v7 = vmov 0.0   ;;  %v343_v8 = vmov 0.0|0.0   ;;  %vm42_vm0 = vcmask 261120   ;;  %s469_s0 = inlined_call_operand.vmem [shape: f32[8,32], index: 0, kind: input, shape index: {}]   ;;  %s470_s1 = inlined_call_operand.vmem [shape: f32[32,144], index: 1, kind: input, shape index: {}]   ;;  %s471_s2 = inlined_call_operand.vmem [shape: f32[1,144], index: 2, kind: input, shape index: {}]   ;;  %s472_s3 = inlined_call_operand.vmem [shape: f32[128,16], index: 3, kind: input, shape index: {}]   ;;  %s473_s4 = inlined_call_operand.vmem [shape: f32[1,16], index: 4, kind: input, shape index: {}]   ;;  %s474_s5 = inlined_call_operand.hbm [shape: f32[8,16], index: 5, kind: output, shape index: {}]  }
   0x1   :  { %v23_v0 = vld [vmem:[%s470_s1 + $0x8] sm:$0xff]  ;;  %v25_v1 = vld [vmem:[%s470_s1 + $0x18] sm:$0xff]  ;;  %v22_v2 = vld [vmem:[%s470_s1] sm:$0xff]  ;;  %110 = vmatprep.mubr.f32.mxu0 %v342_v7  ;;  %290 = vmatprep.subr.bf16.mxu1 %v343_v8 }
   0x2   :  { %v282_v3 = vpack.c.bf16 %v25_v1, %v23_v0  ;;  %v24_v4 = vld [vmem:[%s470_s1 + $0x10] sm:$0xff]  ;;  %v27_v5 = vld [vmem:[%s470_s1 + $0x28] sm:$0xff]  ;;  %v29_v6 = vld [vmem:[%s470_s1 + $0x38] sm:$0xff] }
   0x3   :  { %v284_v9 = vpack.c.bf16 %v24_v4, %v22_v2  ;;  %v286_v10 = vpack.c.bf16 %v29_v6, %v27_v5  ;;  %v26_v11 = vld [vmem:[%s470_s1 + $0x20] sm:$0xff]  ;;  %v28_v12 = vld [vmem:[%s470_s1 + $0x30] sm:$0xff]  ;;  %v119_v14 = vld [vmem:[%s472_s3 + $0x8] sm:$0xff] }
   0x4   :  { %283 = vmatprep.subr.bf16.mxu0 %v282_v3  ;;  %v118_v13 = vld [vmem:[%s472_s3] sm:$0xff]  ;;  %v120_v15 = vld [vmem:[%s472_s3 + $0x10] sm:$0xff]  ;;  %v288_v16 = vpack.c.bf16 %v28_v12, %v26_v11  ;;  %v121_v18 = vld [vmem:[%s472_s3 + $0x18] sm:$0xff] }
   0x5   :  { %285 = vmatpush1.bf16.msra.mxu0 %v284_v9  ;;  %v291_v17 = vpack.c.bf16 %v119_v14, %v118_v13  ;;  %v294_v19 = vpack.c.bf16 %v121_v18, %v120_v15  ;;  %v122_v20 = vld [vmem:[%s472_s3 + $0x20] sm:$0xff]  ;;  %v123_v21 = vld [vmem:[%s472_s3 + $0x28] sm:$0xff] }
   0x6   :  { %287 = vmatprep.subr.bf16.mxu0 %v286_v10  ;;  %v21_v22 = vld [vmem:[%s469_s0] sm:$0xff] }
   0x7   :  { %292 = vmatpush3.bf16.msra.mxu1 %v291_v17 }
   0x8   :  { %293 = vmatprep.subr.bf16.mxu1 %v343_v8 }
   0x9   :  { %289 = vmatpush1.bf16.msra.mxu0 %v288_v16 }
   0xa   :  { %10 = vsyncpa [#allocation3], 0  ;;  %v297_v23 = vpack.c.bf16 %v123_v21, %v122_v20  ;;  %v124_v24 = vld [vmem:[%s472_s3 + $0x30] sm:$0xff]  ;;  %v125_v25 = vld [vmem:[%s472_s3 + $0x38] sm:$0xff]  ;;  %vm344_vm1 = vmmov 0   ;;  %v32_v39 = vlaneseq  ;;  %s345_s18 = smov [#allocation2]  }
   0xb   :  { %295 = vmatpush3.bf16.msra.mxu1 %v294_v19  ;;  %v300_v26 = vpack.c.bf16 %v125_v25, %v124_v24  ;;  %v126_v27 = vld [vmem:[%s472_s3 + $0x40] sm:$0xff]  ;;  %v127_v28 = vld [vmem:[%s472_s3 + $0x48] sm:$0xff]  ;;  %v128_v30 = vld [vmem:[%s472_s3 + $0x50] sm:$0xff]  ;;  %279 = vmatprep.mubr.msk.f32.mxu1 %vm344_vm1, %v342_v7  ;;  %s220_s19 = sshll.u32 %s345_s18, 4  ;;  %vm212_vm2 = vcmask 130048   ;;  %s221_s19 = int_to_ptr.vmem [resolvable:$true] %s220_s19 }
   0xc   :  { %228 = vmatmul.mubr.msk.f32.vlgmr.msra.gmra.mrb[0].mxu0 %vm42_vm0, %v21_v22  ;;  %296 = vmatprep.subr.bf16.mxu1 %v343_v8  ;;  %v303_v29 = vpack.c.bf16 %v127_v28, %v126_v27  ;;  %v129_v31 = vld [vmem:[%s472_s3 + $0x58] sm:$0xff]  ;;  %v130_v33 = vld [vmem:[%s472_s3 + $0x60] sm:$0xff]  ;;  %v131_v34 = vld [vmem:[%s472_s3 + $0x68] sm:$0xff]  ;;  %v33_v40 = vshrl.u32 %v32_v39, 7  ;;  %p323_p1 = scmp.lt.s32.totalorder %s221_s19, %s221_s19 }
   0xd   :  { %v306_v32 = vpack.c.bf16 %v129_v31, %v128_v30  ;;  %v309_v35 = vpack.c.bf16 %v131_v34, %v130_v33  ;;  %v132_v36 = vld [vmem:[%s472_s3 + $0x70] sm:$0xff]  ;;  %v133_v37 = vld [vmem:[%s472_s3 + $0x78] sm:$0xff]  ;;  %v30_v42 = vld [vmem:[%s471_s2] sm:$0x3]  ;;  %s318_s2 = scalar_lea.vmem %s221_s19, 128 }
   0xe   :  { %v312_v38 = vpack.c.bf16 %v133_v37, %v132_v36  ;;  %v34_v41 = vsub.s32 0, %v33_v40  ;;  %v38_v48 = vsub.s32 1, %v33_v40  ;;  %v229_v50 = vld [vmem:[%s473_s4] ss:$0 sm:$0xff]  ;;  %p319_p0 = scmp.ne.s32.totalorder %s221_s19, %s318_s2  ;;  %p324_p2 = scmp.lt.s32.totalorder %s318_s2, %s318_s2 }
   0xf   :  { %298 = vmatpush3.bf16.msra.mxu1 %v297_v23 }
  0x10   :  { %299 = vmatprep.subr.bf16.mxu1 %v343_v8  ;;  %v35_v43 = vrot.slane %v30_v42, %v34_v41  ;;  %v39_v49 = vrot.slane %v30_v42, %v38_v48  ;;  %p325_p3 = por %p324_p2, %p323_p1 }
  0x12   :  { %p326_p4 = pnand %p325_p3, %p319_p0 }
  0x13   :  { %301 = vmatpush3.bf16.msra.mxu1 %v300_v26 }
  0x14   :  { %302 = vmatprep.subr.bf16.mxu1 %v343_v8 }
  0x17   :  { %304 = vmatpush3.bf16.msra.mxu1 %v303_v29 }
  0x18   :  { %305 = vmatprep.subr.bf16.mxu1 %v343_v8 }
  0x1b   :  { %307 = vmatpush3.bf16.msra.mxu1 %v306_v32 }
  0x1c   :  { %308 = vmatprep.subr.bf16.mxu1 %v343_v8 }
  0x1f   :  { %310 = vmatpush3.bf16.msra.mxu1 %v309_v35 }
  0x20   :  { %311 = vmatprep.subr.bf16.mxu1 %v343_v8 }
  0x23   :  { %313 = vmatpush3.bf16.msra.mxu1 %v312_v38 }
  0xdf   :  { %v112_v44 = vpop.f32.mrb[0].mxu0 }
  0xe0   :  { %v113_v45 = vadd.f32 %v112_v44, %v35_v43  ;;  %v114_v46 = vpop.f32.mrb[1].mxu0 }
  0xe1   :  { %v115_v52 = vadd.f32 %v114_v46, %v39_v49 }
  0xe2   :  { %v117_v47 = vmax.f32 %v113_v45, 0.0 }
  0xe4   :  { %280 = vmatmul.mubr.f32.vlgmr.msra.gmra.mrb[0].mxu1 %v117_v47 }
 0x1b7   :  { %v207_v51 = vpop.f32.mrb[0].mxu1 }
 0x1b8   :  { %v208_v53 = vadd.f32 %v229_v50, %v207_v51  ;;  %v281_v54 = vpop.f32.mrb[1].mxu1 }
 0x1ba   :  { %v211_v55 = vadd.f32 %v208_v53, %v115_v52 }
 0x1bc   :  { %213 = vst.msk [vmem:[#allocation2] sm:$0xff] %vm212_vm2, %v211_v55 }
 0x1bd   :  { %329 = shalt.err (!%p326_p4)
}
 0x1be   :  { %s330_s4 = scalar_lea.hbm %s474_s5, 128 }
 0x1bf   :  { %p331_p5 = scmp.ne.s32.totalorder %s474_s5, %s330_s4  ;;  %p334_p6 = scmp.lt.u32.totalorder %s330_s4, %s474_s5 }
 0x1c1   :  { %p336_p7 = pnand %p334_p6, %p331_p5 }
 0x1c3   :  { %339 = shalt.err (!%p336_p7)
}
 0x1c4   :  { %223 = dma.vmem_to_hbm [thread:$0]  %s221_s19, 128, %s474_s5, [#allocation3]  }
 0x1c5   :  { %340 = dma.done.wait [#allocation3], 128  }
 0x1c6   :  { %341 = vsyncadd [#allocation3], 4294967168 }
 0x1c7   :  { %227 = vsyncpa [#allocation3], 1 }

// kernel: tpu_custom_call.1
= control target key start
LH: loop header
LB: loop body
LE: loop exit
PB: predicated region body
PF: predicated region fallthrough
CT: control target
= control target key end

     0   :  { %v342_v7 = vmov 0.0   ;;  %v343_v8 = vmov 0.0|0.0   ;;  %vm42_vm0 = vcmask 261120   ;;  %s469_s0 = inlined_call_operand.vmem [shape: f32[8,32], index: 0, kind: input, shape index: {}]   ;;  %s470_s1 = inlined_call_operand.vmem [shape: f32[32,144], index: 1, kind: input, shape index: {}]   ;;  %s471_s2 = inlined_call_operand.vmem [shape: f32[1,144], index: 2, kind: input, shape index: {}]   ;;  %s472_s3 = inlined_call_operand.vmem [shape: f32[128,16], index: 3, kind: input, shape index: {}]   ;;  %s473_s4 = inlined_call_operand.vmem [shape: f32[1,16], index: 4, kind: input, shape index: {}]   ;;  %s474_s5 = inlined_call_operand.hbm [shape: f32[8,16], index: 5, kind: output, shape index: {}]  }
   0x1   :  { %v23_v0 = vld [vmem:[%s470_s1 + $0x8] sm:$0xff]  ;;  %v25_v1 = vld [vmem:[%s470_s1 + $0x18] sm:$0xff]  ;;  %v22_v2 = vld [vmem:[%s470_s1] sm:$0xff]  ;;  %110 = vmatprep.mubr.f32.mxu0 %v342_v7  ;;  %290 = vmatprep.subr.bf16.mxu1 %v343_v8 }
   0x2   :  { %v282_v3 = vpack.c.bf16 %v25_v1, %v23_v0  ;;  %v24_v4 = vld [vmem:[%s470_s1 + $0x10] sm:$0xff]  ;;  %v27_v5 = vld [vmem:[%s470_s1 + $0x28] sm:$0xff]  ;;  %v29_v6 = vld [vmem:[%s470_s1 + $0x38] sm:$0xff] }
   0x3   :  { %v284_v9 = vpack.c.bf16 %v24_v4, %v22_v2  ;;  %v286_v10 = vpack.c.bf16 %v29_v6, %v27_v5  ;;  %v26_v11 = vld [vmem:[%s470_s1 + $0x20] sm:$0xff]  ;;  %v28_v12 = vld [vmem:[%s470_s1 + $0x30] sm:$0xff]  ;;  %v119_v14 = vld [vmem:[%s472_s3 + $0x8] sm:$0xff] }
   0x4   :  { %283 = vmatprep.subr.bf16.mxu0 %v282_v3  ;;  %v118_v13 = vld [vmem:[%s472_s3] sm:$0xff]  ;;  %v120_v15 = vld [vmem:[%s472_s3 + $0x10] sm:$0xff]  ;;  %v288_v16 = vpack.c.bf16 %v28_v12, %v26_v11  ;;  %v121_v18 = vld [vmem:[%s472_s3 + $0x18] sm:$0xff] }
   0x5   :  { %285 = vmatpush1.bf16.msra.mxu0 %v284_v9  ;;  %v291_v17 = vpack.c.bf16 %v119_v14, %v118_v13  ;;  %v294_v19 = vpack.c.bf16 %v121_v18, %v120_v15  ;;  %v122_v20 = vld [vmem:[%s472_s3 + $0x20] sm:$0xff]  ;;  %v123_v21 = vld [vmem:[%s472_s3 + $0x28] sm:$0xff] }
   0x6   :  { %287 = vmatprep.subr.bf16.mxu0 %v286_v10  ;;  %v21_v22 = vld [vmem:[%s469_s0] sm:$0xff] }
   0x7   :  { %292 = vmatpush3.bf16.msra.mxu1 %v291_v17 }
   0x8   :  { %293 = vmatprep.subr.bf16.mxu1 %v343_v8 }
   0x9   :  { %289 = vmatpush1.bf16.msra.mxu0 %v288_v16 }
   0xa   :  { %10 = vsyncpa [#allocation3], 0  ;;  %v297_v23 = vpack.c.bf16 %v123_v21, %v122_v20  ;;  %v124_v24 = vld [vmem:[%s472_s3 + $0x30] sm:$0xff]  ;;  %v125_v25 = vld [vmem:[%s472_s3 + $0x38] sm:$0xff]  ;;  %vm344_vm1 = vmmov 0   ;;  %v32_v39 = vlaneseq  ;;  %s345_s18 = smov [#allocation2]  }
   0xb   :  { %295 = vmatpush3.bf16.msra.mxu1 %v294_v19  ;;  %v300_v26 = vpack.c.bf16 %v125_v25, %v124_v24  ;;  %v126_v27 = vld [vmem:[%s472_s3 + $0x40] sm:$0xff]  ;;  %v127_v28 = vld [vmem:[%s472_s3 + $0x48] sm:$0xff]  ;;  %v128_v30 = vld [vmem:[%s472_s3 + $0x50] sm:$0xff]  ;;  %279 = vmatprep.mubr.msk.f32.mxu1 %vm344_vm1, %v342_v7  ;;  %s220_s19 = sshll.u32 %s345_s18, 4  ;;  %vm212_vm2 = vcmask 130048   ;;  %s221_s19 = int_to_ptr.vmem [resolvable:$true] %s220_s19 }
   0xc   :  { %228 = vmatmul.mubr.msk.f32.vlgmr.msra.gmra.mrb[0].mxu0 %vm42_vm0, %v21_v22  ;;  %296 = vmatprep.subr.bf16.mxu1 %v343_v8  ;;  %v303_v29 = vpack.c.bf16 %v127_v28, %v126_v27  ;;  %v129_v31 = vld [vmem:[%s472_s3 + $0x58] sm:$0xff]  ;;  %v130_v33 = vld [vmem:[%s472_s3 + $0x60] sm:$0xff]  ;;  %v131_v34 = vld [vmem:[%s472_s3 + $0x68] sm:$0xff]  ;;  %v33_v40 = vshrl.u32 %v32_v39, 7  ;;  %p323_p1 = scmp.lt.s32.totalorder %s221_s19, %s221_s19 }
   0xd   :  { %v306_v32 = vpack.c.bf16 %v129_v31, %v128_v30  ;;  %v309_v35 = vpack.c.bf16 %v131_v34, %v130_v33  ;;  %v132_v36 = vld [vmem:[%s472_s3 + $0x70] sm:$0xff]  ;;  %v133_v37 = vld [vmem:[%s472_s3 + $0x78] sm:$0xff]  ;;  %v30_v42 = vld [vmem:[%s471_s2] sm:$0x3]  ;;  %s318_s2 = scalar_lea.vmem %s221_s19, 128 }
   0xe   :  { %v312_v38 = vpack.c.bf16 %v133_v37, %v132_v36  ;;  %v34_v41 = vsub.s32 0, %v33_v40  ;;  %v38_v48 = vsub.s32 1, %v33_v40  ;;  %v229_v50 = vld [vmem:[%s473_s4] ss:$0 sm:$0xff]  ;;  %p319_p0 = scmp.ne.s32.totalorder %s221_s19, %s318_s2  ;;  %p324_p2 = scmp.lt.s32.totalorder %s318_s2, %s318_s2 }
   0xf   :  { %298 = vmatpush3.bf16.msra.mxu1 %v297_v23 }
  0x10   :  { %299 = vmatprep.subr.bf16.mxu1 %v343_v8  ;;  %v35_v43 = vrot.slane %v30_v42, %v34_v41  ;;  %v39_v49 = vrot.slane %v30_v42, %v38_v48  ;;  %p325_p3 = por %p324_p2, %p323_p1 }
  0x12   :  { %p326_p4 = pnand %p325_p3, %p319_p0 }
  0x13   :  { %301 = vmatpush3.bf16.msra.mxu1 %v300_v26 }
  0x14   :  { %302 = vmatprep.subr.bf16.mxu1 %v343_v8 }
  0x17   :  { %304 = vmatpush3.bf16.msra.mxu1 %v303_v29 }
  0x18   :  { %305 = vmatprep.subr.bf16.mxu1 %v343_v8 }
  0x1b   :  { %307 = vmatpush3.bf16.msra.mxu1 %v306_v32 }
  0x1c   :  { %308 = vmatprep.subr.bf16.mxu1 %v343_v8 }
  0x1f   :  { %310 = vmatpush3.bf16.msra.mxu1 %v309_v35 }
  0x20   :  { %311 = vmatprep.subr.bf16.mxu1 %v343_v8 }
  0x23   :  { %313 = vmatpush3.bf16.msra.mxu1 %v312_v38 }
  0xdf   :  { %v112_v44 = vpop.f32.mrb[0].mxu0 }
  0xe0   :  { %v113_v45 = vadd.f32 %v112_v44, %v35_v43  ;;  %v114_v46 = vpop.f32.mrb[1].mxu0 }
  0xe1   :  { %v115_v52 = vadd.f32 %v114_v46, %v39_v49 }
  0xe2   :  { %v117_v47 = vmax.f32 %v113_v45, 0.0 }
  0xe4   :  { %280 = vmatmul.mubr.f32.vlgmr.msra.gmra.mrb[0].mxu1 %v117_v47 }
 0x1b7   :  { %v207_v51 = vpop.f32.mrb[0].mxu1 }
 0x1b8   :  { %v208_v53 = vadd.f32 %v229_v50, %v207_v51  ;;  %v281_v54 = vpop.f32.mrb[1].mxu1 }
 0x1ba   :  { %v211_v55 = vadd.f32 %v208_v53, %v115_v52 }
 0x1bc   :  { %213 = vst.msk [vmem:[#allocation2] sm:$0xff] %vm212_vm2, %v211_v55 }
 0x1bd   :  { %329 = shalt.err (!%p326_p4)
}
 0x1be   :  { %s330_s4 = scalar_lea.hbm %s474_s5, 128 }
 0x1bf   :  { %p331_p5 = scmp.ne.s32.totalorder %s474_s5, %s330_s4  ;;  %p334_p6 = scmp.lt.u32.totalorder %s330_s4, %s474_s5 }
 0x1c1   :  { %p336_p7 = pnand %p334_p6, %p331_p5 }
 0x1c3   :  { %339 = shalt.err (!%p336_p7)
}
 0x1c4   :  { %223 = dma.vmem_to_hbm [thread:$0]  %s221_s19, 128, %s474_s5, [#allocation3]  }
 0x1c5   :  { %340 = dma.done.wait [#allocation3], 128  }
 0x1c6   :  { %341 = vsyncadd [#allocation3], 4294967168 }
 0x1c7   :  { %227 = vsyncpa [#allocation3], 1 }

</bundles_post_ra>
